<compile_context>
chip_gen: v7x
topology: tpu7x:2x2x1
jax: 0.10.0
libtpu: 0.0.40
codegen_flags: <defaults>
</compile_context>

<pallas_src>
import math

import jax
import jax.numpy as jnp
from jax.experimental import pallas as pl
from jax.experimental.pallas import tpu as pltpu


def _round_up(a, m):
    return (a + m - 1) // m * m


def _tpu_generation():
    """Best-effort TPU generation detection for VMEM budgets / VPU-MXU crossover."""
    try:
        kind = jax.devices()[0].device_kind.lower()
    except Exception:
        return "unknown"
    if "v6" in kind:
        return "v6e"
    if "7" in kind:
        return "v7x"
    if "v5e" in kind or "v5 lite" in kind or "v5lite" in kind:
        return "v5e"
    if "v5" in kind:
        return "v5p"
    return "unknown"


# (tile-sizing budget, vmem_limit_bytes cap) per generation, in bytes.
_GEN_VMEM = {
    "v5e": (12 << 20, 100 << 20),   # 16 MiB default scoped / 128 MiB physical
    "v5p": (48 << 20, 100 << 20),
    "v6e": (64 << 20, 100 << 20),   # 32 MiB default scoped / 128 MiB physical
    "v7x": (40 << 20, 48 << 20),    # only 64 MiB physical VMEM per TensorCore
    "unknown": (12 << 20, 32 << 20),
}

_MAX_TILE_LANES = 65536  # ~2 MiB X tile for tiny channels; keeps codegen sane.


def _make_mxu_kernel(tb, precision):
    """MXU contraction, one matmul per folded batch row (tb is small & static)."""

    def kernel(w_ref, x_ref, o_ref):
        w = w_ref[...]                              # [C_out, C_in]
        for b in range(tb):
            o_ref[b] = jnp.dot(
                w, x_ref[b],                        # [C_in, TL]
                preferred_element_type=jnp.float32,
                precision=precision,
            ).astype(o_ref.dtype)

    return kernel


def _make_vpu_kernel(c_in, tb):
    """Unrolled VPU broadcast-FMA contraction for tiny channel counts."""

    def kernel(w_ref, x_ref, o_ref):
        w = w_ref[...].astype(jnp.float32)          # [C_out, C_in]
        for b in range(tb):
            xb = x_ref[b].astype(jnp.float32)       # [C_in, TL]
            acc = w[:, 0:1] * xb[0:1, :]            # [C_out, TL]
            for i in range(1, c_in):
                acc = acc + w[:, i:i + 1] * xb[i:i + 1, :]
            o_ref[b] = acc.astype(o_ref.dtype)

    return kernel


def vn_linear(x, weight, *, tile_l=None, tile_b=None):
    """VNLinear forward.

    x:      [B, C_in, 3, N, ...]   (any number of trailing dims)
    weight: [C_out, C_in]          (nn.Linear weight layout)
    returns [B, C_out, 3, N, ...]
    """
    C_out, C_in = weight.shape
    assert x.ndim >= 3 and x.shape[1] == C_in, "channel dim mismatch"

    B = x.shape[0]
    trail = x.shape[2:]                       # (3, N, ...)
    L = math.prod(trail)
    weight = weight.astype(x.dtype)

    gen = _tpu_generation()
    budget, vmem_cap = _GEN_VMEM.get(gen, _GEN_VMEM["unknown"])

    # ---- Layout: free collapse, or one HBM-side repack when L would force
    #      masked (<128-lane) stores on every tile.
    repack = (L < 128) and (B > 1)
    if repack:
        x3d = jnp.moveaxis(x, 1, 0).reshape(1, C_in, B * L)   # lanes carry B*L
        B_eff, L_eff = 1, B * L
    else:
        x3d = x.reshape(B, C_in, L)                            # free reshape
        B_eff, L_eff = B, L

    # ---- Padding-aware per-lane VMEM cost: double-buffered X + Y blocks plus
    #      in-kernel f32 temporaries (acc / matmul result), all rounded up to
    #      the (sublane, 128) tile of the dtype.
    itemsize = x.dtype.itemsize
    sub = {4: 8, 2: 16, 1: 32}.get(itemsize, 8)
    c_in_pad = _round_up(C_in, sub)
    c_out_pad = _round_up(C_out, sub)
    w_bytes = 2 * _round_up(C_out, sub) * _round_up(C_in, 128) * itemsize
    bytes_per_lane = (2 * (c_in_pad + c_out_pad) * itemsize   # X+Y, double-buffered
                      + 2 * c_out_pad * 4)                    # f32 temps headroom
    avail = max(budget - w_bytes, 2 << 20)

    # ---- VPU vs MXU crossover (narrower on v7x: faster per-core HBM would make
    #      the VALU the first slot to saturate at the old threshold).
    if gen == "v7x":
        use_vpu = C_in <= 4 and C_out <= 8
    else:
        use_vpu = C_in <= 8 and C_out <= 32
    tb_cap = 16 if use_vpu else 8

    # ---- Lane tile: as large as the budget allows (multiple of 128, capped).
    if tile_l is None:
        tile_l = (avail // bytes_per_lane) // 128 * 128
        tile_l = max(128, min(tile_l, _MAX_TILE_LANES))
    if tile_l >= L_eff:
        tile_l = L_eff                            # full width: always block-legal
    else:
        tile_l = max(128, tile_l // 128 * 128)    # keep (8,128)-legal

    # ---- Batch tile: fold batch rows per step once the lane tile covers L.
    if tile_b is None:
        if tile_l == L_eff:
            per_batch = bytes_per_lane * _round_up(L_eff, 128)
            tile_b = max(1, avail // per_batch)
        else:
            tile_b = 1
    tile_b = int(min(tile_b, B_eff, tb_cap))

    grid_b = pl.cdiv(B_eff, tile_b)
    grid_l = pl.cdiv(L_eff, tile_l)
    # Keep >= 2 grid steps when possible so the "parallel" axes can actually be
    # sharded across v7x's two TensorCores.
    if grid_b * grid_l < 2 and B_eff >= 2:
        tile_b = pl.cdiv(B_eff, 2)
        grid_b = pl.cdiv(B_eff, tile_b)

    need = w_bytes + bytes_per_lane * tile_b * _round_up(tile_l, 128)
    vmem_limit = int(min(vmem_cap, max(need * 4 // 3 + (2 << 20), 32 << 20)))

    # f32 inputs: request HIGHEST so the MXU path matches a true f32 nn.Linear
    # (perf-neutral: the kernel is HBM-bound, extra MXU passes are hidden).
    precision = jax.lax.Precision.HIGHEST if x.dtype == jnp.float32 else None
    kernel = (_make_vpu_kernel(C_in, tile_b) if use_vpu
              else _make_mxu_kernel(tile_b, precision))

    y3d = pl.pallas_call(
        kernel,
        out_shape=jax.ShapeDtypeStruct((B_eff, C_out, L_eff), x.dtype),
        grid_spec=pltpu.PrefetchScalarGridSpec(
            num_scalar_prefetch=0,
            grid=(grid_b, grid_l),
            in_specs=[
                pl.BlockSpec((C_out, C_in), lambda b, l: (0, 0)),              # W resident
                pl.BlockSpec((tile_b, C_in, tile_l), lambda b, l: (b, 0, l)),  # X tile
            ],
            out_specs=pl.BlockSpec((tile_b, C_out, tile_l), lambda b, l: (b, 0, l)),
        ),
        compiler_params=pltpu.CompilerParams(
            dimension_semantics=("parallel", "parallel"),  # megacore sharding
            vmem_limit_bytes=vmem_limit,
        ),
    )(weight, x3d)

    if repack:
        y = y3d.reshape(C_out, B, *trail)
        return jnp.moveaxis(y, 0, 1)
    return y3d.reshape(B, C_out, *trail)


if __name__ == "__main__":
    key = jax.random.PRNGKey(0)
    k_x1, k_w1, k_x2, k_w2, k_x3, k_w3 = jax.random.split(key, 6)
    HI = jax.lax.Precision.HIGHEST

    # --- Test 1: typical tiny-channel VN regime, L < 128 -> lane-dense repack,
    #     VPU broadcast-FMA path, single full-width tile.
    B, C_in, C_out, N = 2, 4, 8, 16
    x1 = jax.random.normal(k_x1, (B, C_in, 3, N), dtype=jnp.float32)
    b1 = 1.0 / math.sqrt(C_in)
    w1 = jax.random.uniform(k_w1, (C_out, C_in), minval=-b1, maxval=b1,
                            dtype=jnp.float32)
    y1 = jax.block_until_ready(vn_linear(x1, w1))
    y1_ref = jnp.einsum("oi,bixn->boxn", w1, x1, precision=HI)
    assert y1.shape == (B, C_out, 3, N)
    assert jnp.allclose(y1, y1_ref, atol=1e-4, rtol=1e-4)

    # --- Test 2: larger channels + explicit ragged lane tiling -> MXU path
    #     (HIGHEST precision for f32 parity), grid = cdiv with masked last tile.
    B2, C_in2, C_out2, N2 = 2, 32, 64, 100          # L = 300, tile_l=128 -> 3 tiles
    x2 = jax.random.normal(k_x2, (B2, C_in2, 3, N2), dtype=jnp.float32)
    b2 = 1.0 / math.sqrt(C_in2)
    w2 = jax.random.uniform(k_w2, (C_out2, C_in2), minval=-b2, maxval=b2,
                            dtype=jnp.float32)
    y2 = jax.block_until_ready(vn_linear(x2, w2, tile_l=128))
    y2_ref = jnp.einsum("oi,bixn->boxn", w2, x2, precision=HI)
    assert y2.shape == (B2, C_out2, 3, N2)
    assert jnp.allclose(y2, y2_ref, atol=1e-4, rtol=1e-4)

    # --- Test 3: auto tiling with batch blocking (full-width lane tile, TB>1,
    #     grid split to keep >=2 steps); MXU on v7x, VPU elsewhere.
    B3, C_in3, C_out3, N3 = 4, 8, 32, 64            # L = 192
    x3 = jax.random.normal(k_x3, (B3, C_in3, 3, N3), dtype=jnp.float32)
    b3 = 1.0 / math.sqrt(C_in3)
    w3 = jax.random.uniform(k_w3, (C_out3, C_in3), minval=-b3, maxval=b3,
                            dtype=jnp.float32)
    y3 = jax.block_until_ready(vn_linear(x3, w3))
    y3_ref = jnp.einsum("oi,bixn->boxn", w3, x3, precision=HI)
    assert y3.shape == (B3, C_out3, 3, N3)
    assert jnp.allclose(y3, y3_ref, atol=1e-4, rtol=1e-4)

    print("KERNEL_OK")
</pallas_src>

<mosaic_0001>
module attributes {stable_mosaic.version = 11 : i64} {
  func.func @kernel(%arg0: i32, %arg1: i32, %arg2: memref<8x4xf32, #tpu.memory_space<vmem>>, %arg3: memref<1x4x96xf32, #tpu.memory_space<vmem>>, %arg4: memref<1x8x96xf32, #tpu.memory_space<vmem>>) attributes {dimension_semantics = [#tpu.dimension_semantics<parallel>, #tpu.dimension_semantics<parallel>], iteration_bounds = array<i64: 1, 1>, scalar_prefetch = 0 : i64, scratch_operands = 0 : i64, tpu.core_type = #tpu.core_type<tc>, window_params = [{pipeline_mode = #tpu.pipeline_mode<synchronous>, transform_indices = @transform_0, window_bounds = array<i64: 8, 4>}, {transform_indices = @transform_1, window_bounds = array<i64: 1, 4, 96>}, {transform_indices = @transform_2, window_bounds = array<i64: 1, 8, 96>}]} {
    %c0 = arith.constant 0 : index
    %c0_0 = arith.constant 0 : index
    %0 = vector.load %arg2[%c0, %c0_0] : memref<8x4xf32, #tpu.memory_space<vmem>>, vector<8x4xf32>
    %c0_1 = arith.constant 0 : index
    %c0_2 = arith.constant 0 : index
    %c0_3 = arith.constant 0 : index
    %1 = vector.load %arg3[%c0_1, %c0_2, %c0_3] : memref<1x4x96xf32, #tpu.memory_space<vmem>>, vector<1x4x96xf32>
    %2 = vector.shape_cast %1 : vector<1x4x96xf32> to vector<4x96xf32>
    %3 = vector.extract_strided_slice %0 {offsets = [0, 0], sizes = [8, 1], strides = [1, 1]} : vector<8x4xf32> to vector<8x1xf32>
    %4 = vector.extract_strided_slice %2 {offsets = [0, 0], sizes = [1, 96], strides = [1, 1]} : vector<4x96xf32> to vector<1x96xf32>
    %5 = vector.broadcast %3 : vector<8x1xf32> to vector<8x96xf32>
    %6 = vector.broadcast %4 : vector<1x96xf32> to vector<8x96xf32>
    %7 = arith.mulf %5, %6 : vector<8x96xf32>
    %8 = vector.extract_strided_slice %0 {offsets = [0, 1], sizes = [8, 1], strides = [1, 1]} : vector<8x4xf32> to vector<8x1xf32>
    %9 = vector.extract_strided_slice %2 {offsets = [1, 0], sizes = [1, 96], strides = [1, 1]} : vector<4x96xf32> to vector<1x96xf32>
    %10 = vector.broadcast %8 : vector<8x1xf32> to vector<8x96xf32>
    %11 = vector.broadcast %9 : vector<1x96xf32> to vector<8x96xf32>
    %12 = arith.mulf %10, %11 : vector<8x96xf32>
    %13 = arith.addf %7, %12 : vector<8x96xf32>
    %14 = vector.extract_strided_slice %0 {offsets = [0, 2], sizes = [8, 1], strides = [1, 1]} : vector<8x4xf32> to vector<8x1xf32>
    %15 = vector.extract_strided_slice %2 {offsets = [2, 0], sizes = [1, 96], strides = [1, 1]} : vector<4x96xf32> to vector<1x96xf32>
    %16 = vector.broadcast %14 : vector<8x1xf32> to vector<8x96xf32>
    %17 = vector.broadcast %15 : vector<1x96xf32> to vector<8x96xf32>
    %18 = arith.mulf %16, %17 : vector<8x96xf32>
    %19 = arith.addf %13, %18 : vector<8x96xf32>
    %20 = vector.extract_strided_slice %0 {offsets = [0, 3], sizes = [8, 1], strides = [1, 1]} : vector<8x4xf32> to vector<8x1xf32>
    %21 = vector.extract_strided_slice %2 {offsets = [3, 0], sizes = [1, 96], strides = [1, 1]} : vector<4x96xf32> to vector<1x96xf32>
    %22 = vector.broadcast %20 : vector<8x1xf32> to vector<8x96xf32>
    %23 = vector.broadcast %21 : vector<1x96xf32> to vector<8x96xf32>
    %24 = arith.mulf %22, %23 : vector<8x96xf32>
    %25 = arith.addf %19, %24 : vector<8x96xf32>
    %c0_4 = arith.constant 0 : index
    %c0_5 = arith.constant 0 : index
    %c0_6 = arith.constant 0 : index
    %26 = vector.load %arg4[%c0_4, %c0_5, %c0_6] : memref<1x8x96xf32, #tpu.memory_space<vmem>>, vector<1x8x96xf32>
    %27 = vector.shape_cast %26 : vector<1x8x96xf32> to vector<8x96xf32>
    %28 = vector.shape_cast %25 : vector<8x96xf32> to vector<1x8x96xf32>
    tpu.vector_store %arg4[%c0_4, %c0_5, %c0_6], %28 {strides = array<i32>} : memref<1x8x96xf32, #tpu.memory_space<vmem>>, vector<1x8x96xf32>,
    return
  }
  func.func @transform_0(%arg0: i32, %arg1: i32) -> (i32, i32) {
    %c0_i32 = arith.constant 0 : i32
    %c0_i32_0 = arith.constant 0 : i32
    %c0_i32_1 = arith.constant 0 : i32
    return %c0_i32, %c0_i32_0 : i32, i32
  }
  func.func @transform_1(%arg0: i32, %arg1: i32) -> (i32, i32, i32) {
    %c0_i32 = arith.constant 0 : i32
    %c0_i32_0 = arith.constant 0 : i32
    return %arg0, %c0_i32, %arg1 : i32, i32, i32
  }
  func.func @transform_2(%arg0: i32, %arg1: i32) -> (i32, i32, i32) {
    %c0_i32 = arith.constant 0 : i32
    %c0_i32_0 = arith.constant 0 : i32
    return %arg0, %c0_i32, %arg1 : i32, i32, i32
  }
}

</mosaic_0001>

<bundles_post_ra>
// kernel: tpu_custom_call.1
= control target key start
LH: loop header
LB: loop body
LE: loop exit
PB: predicated region body
PF: predicated region fallthrough
CT: control target
= control target key end

     0   :  { %v104_v1 = vmov 0   ;;  %v105_v2 = vmov 2   ;;  %s142_s0 = inlined_call_operand.vmem [shape: f32[8,4], index: 0, kind: input, shape index: {}]   ;;  %s143_s1 = inlined_call_operand.vmem [shape: f32[1,4,96], index: 1, kind: input, shape index: {}]   ;;  %s144_s2 = inlined_call_operand.hbm [shape: f32[1,8,96], index: 2, kind: output, shape index: {}]  }
   0x1   :  { %v12_v0 = vld [vmem:[%s142_s0] sm:$0xff]  ;;  %75 = vset.pattern.permute.xlu0 %v104_v1  ;;  %77 = vset.pattern.permute.xlu1 %v105_v2 }
   0x2   :  { %7 = vsyncpa [#allocation3], 0  ;;  %16 = vperm.xlu0 %75, %v12_v0   ;;  %35 = vperm.xlu1 %77, %v12_v0   ;;  %v106_v3 = vmov 1   ;;  %v107_v4 = vmov 3   ;;  %v19_v5 = vlaneseq  ;;  %v13_v9 = vld [vmem:[%s143_s1] sm:$0xf] }
   0x3   :  { %s108_s12 = smov [#allocation2]   ;;  %vm54_vm0 = vcmask 785408  }
   0x4   :  { %v20_v6 = vshrl.u32 %v19_v5, 7  ;;  %s62_s13 = sshll.u32 %s108_s12, 4  ;;  %s63_s13 = int_to_ptr.vmem [resolvable:$true] %s62_s13 }
   0x5   :  { %s80_s1 = scalar_lea.vmem %s63_s13, 128  ;;  %p85_p1 = scmp.lt.s32.totalorder %s63_s13, %s63_s13 }
   0x6   :  { %76 = vset.pattern.permute.xlu0 %v106_v3  ;;  %78 = vset.pattern.permute.xlu1 %v107_v4  ;;  %v21_v7 = vsub.s32 0, %v20_v6  ;;  %v30_v8 = vsub.s32 1, %v20_v6  ;;  %v40_v11 = vsub.s32 2, %v20_v6  ;;  %v50_v13 = vsub.s32 3, %v20_v6  ;;  %p81_p0 = scmp.ne.s32.totalorder %s63_s13, %s80_s1  ;;  %p86_p2 = scmp.lt.s32.totalorder %s80_s1, %s80_s1 }
   0x7   :  { %25 = vperm.xlu0 %76, %v12_v0   ;;  %45 = vperm.xlu1 %78, %v12_v0  }
   0x8   :  { %v22_v14 = vrot.slane %v13_v9, %v21_v7  ;;  %v31_v15 = vrot.slane %v13_v9, %v30_v8  ;;  %v41_v16 = vrot.slane %v13_v9, %v40_v11  ;;  %v51_v17 = vrot.slane %v13_v9, %v50_v13  ;;  %p87_p3 = por %p86_p2, %p85_p1 }
   0xa   :  { %p88_p4 = pnand %p87_p3, %p81_p0 }
   0xb   :  { %79 = vset.pattern.permute.xlu0 %v107_v4 }
  0x81   :  { %v17_v10 = vpop.permute.xlu0 %16  ;;  %v36_v12 = vpop.permute.xlu1 %35 }
  0x82   :  { %v23_v20 = vmul.f32 %v22_v14, %v17_v10  ;;  %v42_v22 = vmul.f32 %v41_v16, %v36_v12 }
  0x86   :  { %v26_v18 = vpop.permute.xlu0 %25  ;;  %v46_v19 = vpop.permute.xlu1 %45 }
  0x87   :  { %v32_v21 = vmul.f32 %v31_v15, %v26_v18  ;;  %v52_v24 = vmul.f32 %v51_v17, %v46_v19 }
  0x89   :  { %v33_v23 = vadd.f32 %v32_v21, %v23_v20 }
  0x8b   :  { %v43_v25 = vadd.f32 %v42_v22, %v33_v23 }
  0x8d   :  { %v53_v26 = vadd.f32 %v52_v24, %v43_v25 }
  0x8f   :  { %55 = vst.msk [vmem:[#allocation2] sm:$0xff] %vm54_vm0, %v53_v26 }
  0x90   :  { %91 = shalt.err (!%p88_p4)
}
  0x91   :  { %s92_s16 = scalar_lea.hbm %s144_s2, 128 }
  0x92   :  { %p93_p5 = scmp.ne.s32.totalorder %s144_s2, %s92_s16  ;;  %p96_p6 = scmp.lt.u32.totalorder %s92_s16, %s144_s2 }
  0x94   :  { %p98_p7 = pnand %p96_p6, %p93_p5 }
  0x96   :  { %101 = shalt.err (!%p98_p7)
}
  0x97   :  { %65 = dma.vmem_to_hbm [thread:$0]  %s63_s13, 128, %s144_s2, [#allocation3]  }
  0x98   :  { %102 = dma.done.wait [#allocation3], 128  }
  0x99   :  { %103 = vsyncadd [#allocation3], 4294967168 }
  0x9a   :  { %69 = vsyncpa [#allocation3], 1 }

</bundles_post_ra>
